<compile_context>
chip_gen: v7x
topology: tpu7x:2x2x1
jax: 0.10.0
libtpu: 0.0.40
codegen_flags: <defaults>
</compile_context>

<pallas_src>
import functools
import math
import numbers

import numpy as np
import jax
import jax.numpy as jnp
from jax.experimental import pallas as pl
from jax.experimental.pallas import tpu as pltpu


# ----------------------------------------------------------------------------
# Host-side constant-operator construction (folds gaussian + reflect-pad + /3)
# ----------------------------------------------------------------------------
def _gauss1d(size, std):
    g = np.arange(size, dtype=np.float64)
    mean = (size - 1) / 2.0
    k = np.exp(-(((g - mean) / std) ** 2) / 2.0) / (std * math.sqrt(2.0 * math.pi))
    # 1D normalization == 2D normalization for a separable (outer-product) kernel.
    return k / k.sum()


def _reflect_matrix(n, pad):
    """P (n + 2*pad, n) with P[i, reflect(i - pad)] = 1 (PyTorch 'reflect')."""
    assert pad < n, "reflect padding requires pad < spatial size"
    n_pad = n + 2 * pad
    P = np.zeros((n_pad, n), dtype=np.float64)
    for i in range(n_pad):
        j = i - pad
        if j < 0:
            j = -j
        elif j >= n:
            j = 2 * (n - 1) - j
        P[i, j] = 1.0
    return P


def make_cascade_operators(kernel_size, sigma, H, W):
    """Returns (ah, bw, pad): ah (3, H, H), bw (3, W, W) float32 operators s.t.
    forward(x_plane) == sum_t ah[t] @ x_plane @ bw[t]  (exactly the module math)."""
    if isinstance(kernel_size, numbers.Number):
        kernel_size = [kernel_size, kernel_size]
    Kh, Kw = int(kernel_size[0]), int(kernel_size[1])
    assert Kh % 2 == 1 and Kw % 2 == 1, "only odd kernel sizes preserve spatial size"
    pad = int(Kh / 2)
    cascade_coefficients = [0.5, 1.0, 2.0]

    Ph = _reflect_matrix(H, pad)          # (Hp, H)
    Pw = _reflect_matrix(W, pad)          # (Wp, W)
    Hp, Wp = H + 2 * pad, W + 2 * pad

    ah_list, bw_list = [], []
    for coeff in cascade_coefficients:
        kh = _gauss1d(Kh, coeff * sigma)
        kw = _gauss1d(Kw, coeff * sigma)
        # Row pass (valid cross-correlation over padded rows): A (H, Hp)
        A = np.zeros((H, Hp), dtype=np.float64)
        for h in range(H):
            A[h, h:h + Kh] = kh
        # Column pass: B (Wp, W)
        B = np.zeros((Wp, W), dtype=np.float64)
        for w in range(W):
            B[w:w + Kw, w] = kw
        ah_list.append((A @ Ph) / 3.0)    # fold reflect rows + final /3
        bw_list.append(Pw.T @ B)          # fold reflect cols
    ah = jnp.asarray(np.stack(ah_list), dtype=jnp.float32)   # (3, H, H)
    bw = jnp.asarray(np.stack(bw_list), dtype=jnp.float32)   # (3, W, W)
    return ah, bw, pad


# ----------------------------------------------------------------------------
# Pallas kernel: per batch element, all channels, cascade smoothing via MXU
# ----------------------------------------------------------------------------
def cascade_smooth_kernel(x_ref, ah_ref, bw_ref, o_ref, *, C):
    # x_ref / o_ref: (1, C, H, W); ah_ref: (3, H, H); bw_ref: (3, W, W)
    for c in range(C):                     # static unroll (depthwise; C is small)
        xc = x_ref[0, c]                   # (H, W)
        acc = None
        for t in range(3):                 # the three cascade gaussians
            y = jnp.dot(xc, bw_ref[t], preferred_element_type=jnp.float32)   # W pass (MXU)
            z = jnp.dot(ah_ref[t], y, preferred_element_type=jnp.float32)    # H pass (MXU)
            acc = z if acc is None else acc + z
        o_ref[0, c] = acc.astype(o_ref.dtype)


# ----------------------------------------------------------------------------
# Wrapper (forward pass)
# ----------------------------------------------------------------------------
def cascade_gaussian_smoothing(x, ah, bw):
    """x: (N, C, H, W) float32; ah: (3, H, H); bw: (3, W, W)."""
    N, C, H, W = x.shape
    kernel_fn = functools.partial(cascade_smooth_kernel, C=C)
    # NOTE: for very large deepdream pyramid levels, tile H/W (with halo folded
    # into per-tile operators) to respect v7x's 64 MiB VMEM; unnecessary here.
    return pl.pallas_call(
        kernel_fn,
        out_shape=jax.ShapeDtypeStruct((N, C, H, W), x.dtype),
        grid_spec=pltpu.PrefetchScalarGridSpec(
            num_scalar_prefetch=0,
            grid=(N,),
            in_specs=[
                pl.BlockSpec((1, C, H, W), lambda n: (n, 0, 0, 0)),
                pl.BlockSpec((3, H, H), lambda n: (0, 0, 0)),
                pl.BlockSpec((3, W, W), lambda n: (0, 0, 0)),
            ],
            out_specs=pl.BlockSpec((1, C, H, W), lambda n: (n, 0, 0, 0)),
        ),
        compiler_params=pltpu.CompilerParams(
            dimension_semantics=("parallel",),
        ),
    )(x, ah, bw)


# ----------------------------------------------------------------------------
# Pure-JAX reference — built exactly like the torch module (2D kernels,
# reflect pad, depthwise conv, average of three).
# ----------------------------------------------------------------------------
def make_cascade_kernels(kernel_size, sigma):
    if isinstance(kernel_size, numbers.Number):
        kernel_size = [kernel_size, kernel_size]
    cascade_coefficients = [0.5, 1.0, 2.0]
    sigmas = [[coeff * sigma, coeff * sigma] for coeff in cascade_coefficients]
    pad = int(kernel_size[0] / 2)
    meshgrids = jnp.meshgrid(
        *[jnp.arange(size, dtype=jnp.float32) for size in kernel_size],
        indexing="ij",
    )
    kernels = []
    for sig in sigmas:
        kernel = jnp.ones_like(meshgrids[0])
        for size_1d, std_1d, grid in zip(kernel_size, sig, meshgrids):
            mean = (size_1d - 1) / 2
            kernel = kernel * (
                1.0 / (std_1d * math.sqrt(2 * math.pi))
                * jnp.exp(-(((grid - mean) / std_1d) ** 2) / 2)
            )
        kernel = kernel / jnp.sum(kernel)
        kernels.append(kernel)
    return jnp.stack(kernels, axis=0), pad  # (3, K, K)


def reference_forward(x, kernels, pad):
    N, C, H, W = x.shape
    x_pad = jnp.pad(x, ((0, 0), (0, 0), (pad, pad), (pad, pad)), mode="reflect")
    outs = []
    for t in range(3):
        w = jnp.broadcast_to(kernels[t][None, None], (C, 1, *kernels[t].shape))
        outs.append(
            jax.lax.conv_general_dilated(
                x_pad, w, window_strides=(1, 1), padding="VALID",
                dimension_numbers=("NCHW", "OIHW", "NCHW"),
                feature_group_count=C,
            )
        )
    return (outs[0] + outs[1] + outs[2]) / 3.0


if __name__ == "__main__":
    # Module config: kernel_size=9, sigma=3.0 (weights repeated over 3 channels).
    kernel_size, sigma = 9, 3.0
    N, C, H, W = 2, 3, 16, 16

    ah, bw, pad = make_cascade_operators(kernel_size, sigma, H, W)

    key = jax.random.PRNGKey(0)
    x = jax.random.normal(key, (N, C, H, W), dtype=jnp.float32)

    out = jax.block_until_ready(cascade_gaussian_smoothing(x, ah, bw))

    kernels2d, pad_ref = make_cascade_kernels(kernel_size, sigma)
    ref = jax.block_until_ready(reference_forward(x, kernels2d, pad_ref))

    assert out.shape == x.shape, (out.shape, x.shape)
    assert jnp.allclose(out, ref, atol=1e-5, rtol=1e-5), float(
        jnp.max(jnp.abs(out - ref))
    )
    print("KERNEL_OK")
</pallas_src>

<mosaic_0001>
module attributes {stable_mosaic.version = 11 : i64} {
  func.func @cascade_smooth_kernel(%arg0: i32, %arg1: memref<1x3x16x16xf32, #tpu.memory_space<vmem>>, %arg2: memref<3x16x16xf32, #tpu.memory_space<vmem>>, %arg3: memref<3x16x16xf32, #tpu.memory_space<vmem>>, %arg4: memref<1x3x16x16xf32, #tpu.memory_space<vmem>>) attributes {dimension_semantics = [#tpu.dimension_semantics<parallel>], iteration_bounds = array<i64: 2>, scalar_prefetch = 0 : i64, scratch_operands = 0 : i64, tpu.core_type = #tpu.core_type<tc>, window_params = [{transform_indices = @transform_0, window_bounds = array<i64: 1, 3, 16, 16>}, {pipeline_mode = #tpu.pipeline_mode<synchronous>, transform_indices = @transform_1, window_bounds = array<i64: 3, 16, 16>}, {pipeline_mode = #tpu.pipeline_mode<synchronous>, transform_indices = @transform_2, window_bounds = array<i64: 3, 16, 16>}, {transform_indices = @transform_3, window_bounds = array<i64: 1, 3, 16, 16>}]} {
    %c0 = arith.constant 0 : index
    %c0_0 = arith.constant 0 : index
    %c0_1 = arith.constant 0 : index
    %c0_2 = arith.constant 0 : index
    %0 = vector.load %arg1[%c0, %c0_0, %c0_1, %c0_2] : memref<1x3x16x16xf32, #tpu.memory_space<vmem>>, vector<1x1x16x16xf32>
    %1 = vector.shape_cast %0 : vector<1x1x16x16xf32> to vector<16x16xf32>
    %c0_3 = arith.constant 0 : index
    %c0_4 = arith.constant 0 : index
    %c0_5 = arith.constant 0 : index
    %2 = vector.load %arg3[%c0_3, %c0_4, %c0_5] : memref<3x16x16xf32, #tpu.memory_space<vmem>>, vector<1x16x16xf32>
    %3 = vector.shape_cast %2 : vector<1x16x16xf32> to vector<16x16xf32>
    %cst = arith.constant dense<0.000000e+00> : vector<16x16xf32>
    %4 = tpu.matmul %1, %3, %cst {dimension_numbers = #tpu.dot_dimension_numbers<[1], [0], [0], [1], [0, 0, 1, 1], [], []>} : vector<16x16xf32>, vector<16x16xf32>, vector<16x16xf32> -> vector<16x16xf32>
    %c0_6 = arith.constant 0 : index
    %c0_7 = arith.constant 0 : index
    %c0_8 = arith.constant 0 : index
    %5 = vector.load %arg2[%c0_6, %c0_7, %c0_8] : memref<3x16x16xf32, #tpu.memory_space<vmem>>, vector<1x16x16xf32>
    %6 = vector.shape_cast %5 : vector<1x16x16xf32> to vector<16x16xf32>
    %cst_9 = arith.constant dense<0.000000e+00> : vector<16x16xf32>
    %7 = tpu.matmul %6, %4, %cst_9 {dimension_numbers = #tpu.dot_dimension_numbers<[1], [0], [0], [1], [0, 0, 1, 1], [], []>} : vector<16x16xf32>, vector<16x16xf32>, vector<16x16xf32> -> vector<16x16xf32>
    %c1 = arith.constant 1 : index
    %c0_10 = arith.constant 0 : index
    %c0_11 = arith.constant 0 : index
    %8 = vector.load %arg3[%c1, %c0_10, %c0_11] : memref<3x16x16xf32, #tpu.memory_space<vmem>>, vector<1x16x16xf32>
    %9 = vector.shape_cast %8 : vector<1x16x16xf32> to vector<16x16xf32>
    %cst_12 = arith.constant dense<0.000000e+00> : vector<16x16xf32>
    %10 = tpu.matmul %1, %9, %cst_12 {dimension_numbers = #tpu.dot_dimension_numbers<[1], [0], [0], [1], [0, 0, 1, 1], [], []>} : vector<16x16xf32>, vector<16x16xf32>, vector<16x16xf32> -> vector<16x16xf32>
    %c1_13 = arith.constant 1 : index
    %c0_14 = arith.constant 0 : index
    %c0_15 = arith.constant 0 : index
    %11 = vector.load %arg2[%c1_13, %c0_14, %c0_15] : memref<3x16x16xf32, #tpu.memory_space<vmem>>, vector<1x16x16xf32>
    %12 = vector.shape_cast %11 : vector<1x16x16xf32> to vector<16x16xf32>
    %cst_16 = arith.constant dense<0.000000e+00> : vector<16x16xf32>
    %13 = tpu.matmul %12, %10, %cst_16 {dimension_numbers = #tpu.dot_dimension_numbers<[1], [0], [0], [1], [0, 0, 1, 1], [], []>} : vector<16x16xf32>, vector<16x16xf32>, vector<16x16xf32> -> vector<16x16xf32>
    %14 = arith.addf %7, %13 : vector<16x16xf32>
    %c2 = arith.constant 2 : index
    %c0_17 = arith.constant 0 : index
    %c0_18 = arith.constant 0 : index
    %15 = vector.load %arg3[%c2, %c0_17, %c0_18] : memref<3x16x16xf32, #tpu.memory_space<vmem>>, vector<1x16x16xf32>
    %16 = vector.shape_cast %15 : vector<1x16x16xf32> to vector<16x16xf32>
    %cst_19 = arith.constant dense<0.000000e+00> : vector<16x16xf32>
    %17 = tpu.matmul %1, %16, %cst_19 {dimension_numbers = #tpu.dot_dimension_numbers<[1], [0], [0], [1], [0, 0, 1, 1], [], []>} : vector<16x16xf32>, vector<16x16xf32>, vector<16x16xf32> -> vector<16x16xf32>
    %c2_20 = arith.constant 2 : index
    %c0_21 = arith.constant 0 : index
    %c0_22 = arith.constant 0 : index
    %18 = vector.load %arg2[%c2_20, %c0_21, %c0_22] : memref<3x16x16xf32, #tpu.memory_space<vmem>>, vector<1x16x16xf32>
    %19 = vector.shape_cast %18 : vector<1x16x16xf32> to vector<16x16xf32>
    %cst_23 = arith.constant dense<0.000000e+00> : vector<16x16xf32>
    %20 = tpu.matmul %19, %17, %cst_23 {dimension_numbers = #tpu.dot_dimension_numbers<[1], [0], [0], [1], [0, 0, 1, 1], [], []>} : vector<16x16xf32>, vector<16x16xf32>, vector<16x16xf32> -> vector<16x16xf32>
    %21 = arith.addf %14, %20 : vector<16x16xf32>
    %c0_24 = arith.constant 0 : index
    %c0_25 = arith.constant 0 : index
    %c0_26 = arith.constant 0 : index
    %c0_27 = arith.constant 0 : index
    %22 = vector.load %arg4[%c0_24, %c0_25, %c0_26, %c0_27] : memref<1x3x16x16xf32, #tpu.memory_space<vmem>>, vector<1x1x16x16xf32>
    %23 = vector.shape_cast %22 : vector<1x1x16x16xf32> to vector<16x16xf32>
    %24 = vector.shape_cast %21 : vector<16x16xf32> to vector<1x1x16x16xf32>
    tpu.vector_store %arg4[%c0_24, %c0_25, %c0_26, %c0_27], %24 {strides = array<i32>} : memref<1x3x16x16xf32, #tpu.memory_space<vmem>>, vector<1x1x16x16xf32>,
    %c0_28 = arith.constant 0 : index
    %c1_29 = arith.constant 1 : index
    %c0_30 = arith.constant 0 : index
    %c0_31 = arith.constant 0 : index
    %25 = vector.load %arg1[%c0_28, %c1_29, %c0_30, %c0_31] : memref<1x3x16x16xf32, #tpu.memory_space<vmem>>, vector<1x1x16x16xf32>
    %26 = vector.shape_cast %25 : vector<1x1x16x16xf32> to vector<16x16xf32>
    %c0_32 = arith.constant 0 : index
    %c0_33 = arith.constant 0 : index
    %c0_34 = arith.constant 0 : index
    %27 = vector.load %arg3[%c0_32, %c0_33, %c0_34] : memref<3x16x16xf32, #tpu.memory_space<vmem>>, vector<1x16x16xf32>
    %28 = vector.shape_cast %27 : vector<1x16x16xf32> to vector<16x16xf32>
    %cst_35 = arith.constant dense<0.000000e+00> : vector<16x16xf32>
    %29 = tpu.matmul %26, %28, %cst_35 {dimension_numbers = #tpu.dot_dimension_numbers<[1], [0], [0], [1], [0, 0, 1, 1], [], []>} : vector<16x16xf32>, vector<16x16xf32>, vector<16x16xf32> -> vector<16x16xf32>
    %c0_36 = arith.constant 0 : index
    %c0_37 = arith.constant 0 : index
    %c0_38 = arith.constant 0 : index
    %30 = vector.load %arg2[%c0_36, %c0_37, %c0_38] : memref<3x16x16xf32, #tpu.memory_space<vmem>>, vector<1x16x16xf32>
    %31 = vector.shape_cast %30 : vector<1x16x16xf32> to vector<16x16xf32>
    %cst_39 = arith.constant dense<0.000000e+00> : vector<16x16xf32>
    %32 = tpu.matmul %31, %29, %cst_39 {dimension_numbers = #tpu.dot_dimension_numbers<[1], [0], [0], [1], [0, 0, 1, 1], [], []>} : vector<16x16xf32>, vector<16x16xf32>, vector<16x16xf32> -> vector<16x16xf32>
    %c1_40 = arith.constant 1 : index
    %c0_41 = arith.constant 0 : index
    %c0_42 = arith.constant 0 : index
    %33 = vector.load %arg3[%c1_40, %c0_41, %c0_42] : memref<3x16x16xf32, #tpu.memory_space<vmem>>, vector<1x16x16xf32>
    %34 = vector.shape_cast %33 : vector<1x16x16xf32> to vector<16x16xf32>
    %cst_43 = arith.constant dense<0.000000e+00> : vector<16x16xf32>
    %35 = tpu.matmul %26, %34, %cst_43 {dimension_numbers = #tpu.dot_dimension_numbers<[1], [0], [0], [1], [0, 0, 1, 1], [], []>} : vector<16x16xf32>, vector<16x16xf32>, vector<16x16xf32> -> vector<16x16xf32>
    %c1_44 = arith.constant 1 : index
    %c0_45 = arith.constant 0 : index
    %c0_46 = arith.constant 0 : index
    %36 = vector.load %arg2[%c1_44, %c0_45, %c0_46] : memref<3x16x16xf32, #tpu.memory_space<vmem>>, vector<1x16x16xf32>
    %37 = vector.shape_cast %36 : vector<1x16x16xf32> to vector<16x16xf32>
    %cst_47 = arith.constant dense<0.000000e+00> : vector<16x16xf32>
    %38 = tpu.matmul %37, %35, %cst_47 {dimension_numbers = #tpu.dot_dimension_numbers<[1], [0], [0], [1], [0, 0, 1, 1], [], []>} : vector<16x16xf32>, vector<16x16xf32>, vector<16x16xf32> -> vector<16x16xf32>
    %39 = arith.addf %32, %38 : vector<16x16xf32>
    %c2_48 = arith.constant 2 : index
    %c0_49 = arith.constant 0 : index
    %c0_50 = arith.constant 0 : index
    %40 = vector.load %arg3[%c2_48, %c0_49, %c0_50] : memref<3x16x16xf32, #tpu.memory_space<vmem>>, vector<1x16x16xf32>
    %41 = vector.shape_cast %40 : vector<1x16x16xf32> to vector<16x16xf32>
    %cst_51 = arith.constant dense<0.000000e+00> : vector<16x16xf32>
    %42 = tpu.matmul %26, %41, %cst_51 {dimension_numbers = #tpu.dot_dimension_numbers<[1], [0], [0], [1], [0, 0, 1, 1], [], []>} : vector<16x16xf32>, vector<16x16xf32>, vector<16x16xf32> -> vector<16x16xf32>
    %c2_52 = arith.constant 2 : index
    %c0_53 = arith.constant 0 : index
    %c0_54 = arith.constant 0 : index
    %43 = vector.load %arg2[%c2_52, %c0_53, %c0_54] : memref<3x16x16xf32, #tpu.memory_space<vmem>>, vector<1x16x16xf32>
    %44 = vector.shape_cast %43 : vector<1x16x16xf32> to vector<16x16xf32>
    %cst_55 = arith.constant dense<0.000000e+00> : vector<16x16xf32>
    %45 = tpu.matmul %44, %42, %cst_55 {dimension_numbers = #tpu.dot_dimension_numbers<[1], [0], [0], [1], [0, 0, 1, 1], [], []>} : vector<16x16xf32>, vector<16x16xf32>, vector<16x16xf32> -> vector<16x16xf32>
    %46 = arith.addf %39, %45 : vector<16x16xf32>
    %c0_56 = arith.constant 0 : index
    %c1_57 = arith.constant 1 : index
    %c0_58 = arith.constant 0 : index
    %c0_59 = arith.constant 0 : index
    %47 = vector.load %arg4[%c0_56, %c1_57, %c0_58, %c0_59] : memref<1x3x16x16xf32, #tpu.memory_space<vmem>>, vector<1x1x16x16xf32>
    %48 = vector.shape_cast %47 : vector<1x1x16x16xf32> to vector<16x16xf32>
    %49 = vector.shape_cast %46 : vector<16x16xf32> to vector<1x1x16x16xf32>
    tpu.vector_store %arg4[%c0_56, %c1_57, %c0_58, %c0_59], %49 {strides = array<i32>} : memref<1x3x16x16xf32, #tpu.memory_space<vmem>>, vector<1x1x16x16xf32>,
    %c0_60 = arith.constant 0 : index
    %c2_61 = arith.constant 2 : index
    %c0_62 = arith.constant 0 : index
    %c0_63 = arith.constant 0 : index
    %50 = vector.load %arg1[%c0_60, %c2_61, %c0_62, %c0_63] : memref<1x3x16x16xf32, #tpu.memory_space<vmem>>, vector<1x1x16x16xf32>
    %51 = vector.shape_cast %50 : vector<1x1x16x16xf32> to vector<16x16xf32>
    %c0_64 = arith.constant 0 : index
    %c0_65 = arith.constant 0 : index
    %c0_66 = arith.constant 0 : index
    %52 = vector.load %arg3[%c0_64, %c0_65, %c0_66] : memref<3x16x16xf32, #tpu.memory_space<vmem>>, vector<1x16x16xf32>
    %53 = vector.shape_cast %52 : vector<1x16x16xf32> to vector<16x16xf32>
    %cst_67 = arith.constant dense<0.000000e+00> : vector<16x16xf32>
    %54 = tpu.matmul %51, %53, %cst_67 {dimension_numbers = #tpu.dot_dimension_numbers<[1], [0], [0], [1], [0, 0, 1, 1], [], []>} : vector<16x16xf32>, vector<16x16xf32>, vector<16x16xf32> -> vector<16x16xf32>
    %c0_68 = arith.constant 0 : index
    %c0_69 = arith.constant 0 : index
    %c0_70 = arith.constant 0 : index
    %55 = vector.load %arg2[%c0_68, %c0_69, %c0_70] : memref<3x16x16xf32, #tpu.memory_space<vmem>>, vector<1x16x16xf32>
    %56 = vector.shape_cast %55 : vector<1x16x16xf32> to vector<16x16xf32>
    %cst_71 = arith.constant dense<0.000000e+00> : vector<16x16xf32>
    %57 = tpu.matmul %56, %54, %cst_71 {dimension_numbers = #tpu.dot_dimension_numbers<[1], [0], [0], [1], [0, 0, 1, 1], [], []>} : vector<16x16xf32>, vector<16x16xf32>, vector<16x16xf32> -> vector<16x16xf32>
    %c1_72 = arith.constant 1 : index
    %c0_73 = arith.constant 0 : index
    %c0_74 = arith.constant 0 : index
    %58 = vector.load %arg3[%c1_72, %c0_73, %c0_74] : memref<3x16x16xf32, #tpu.memory_space<vmem>>, vector<1x16x16xf32>
    %59 = vector.shape_cast %58 : vector<1x16x16xf32> to vector<16x16xf32>
    %cst_75 = arith.constant dense<0.000000e+00> : vector<16x16xf32>
    %60 = tpu.matmul %51, %59, %cst_75 {dimension_numbers = #tpu.dot_dimension_numbers<[1], [0], [0], [1], [0, 0, 1, 1], [], []>} : vector<16x16xf32>, vector<16x16xf32>, vector<16x16xf32> -> vector<16x16xf32>
    %c1_76 = arith.constant 1 : index
    %c0_77 = arith.constant 0 : index
    %c0_78 = arith.constant 0 : index
    %61 = vector.load %arg2[%c1_76, %c0_77, %c0_78] : memref<3x16x16xf32, #tpu.memory_space<vmem>>, vector<1x16x16xf32>
    %62 = vector.shape_cast %61 : vector<1x16x16xf32> to vector<16x16xf32>
    %cst_79 = arith.constant dense<0.000000e+00> : vector<16x16xf32>
    %63 = tpu.matmul %62, %60, %cst_79 {dimension_numbers = #tpu.dot_dimension_numbers<[1], [0], [0], [1], [0, 0, 1, 1], [], []>} : vector<16x16xf32>, vector<16x16xf32>, vector<16x16xf32> -> vector<16x16xf32>
    %64 = arith.addf %57, %63 : vector<16x16xf32>
    %c2_80 = arith.constant 2 : index
    %c0_81 = arith.constant 0 : index
    %c0_82 = arith.constant 0 : index
    %65 = vector.load %arg3[%c2_80, %c0_81, %c0_82] : memref<3x16x16xf32, #tpu.memory_space<vmem>>, vector<1x16x16xf32>
    %66 = vector.shape_cast %65 : vector<1x16x16xf32> to vector<16x16xf32>
    %cst_83 = arith.constant dense<0.000000e+00> : vector<16x16xf32>
    %67 = tpu.matmul %51, %66, %cst_83 {dimension_numbers = #tpu.dot_dimension_numbers<[1], [0], [0], [1], [0, 0, 1, 1], [], []>} : vector<16x16xf32>, vector<16x16xf32>, vector<16x16xf32> -> vector<16x16xf32>
    %c2_84 = arith.constant 2 : index
    %c0_85 = arith.constant 0 : index
    %c0_86 = arith.constant 0 : index
    %68 = vector.load %arg2[%c2_84, %c0_85, %c0_86] : memref<3x16x16xf32, #tpu.memory_space<vmem>>, vector<1x16x16xf32>
    %69 = vector.shape_cast %68 : vector<1x16x16xf32> to vector<16x16xf32>
    %cst_87 = arith.constant dense<0.000000e+00> : vector<16x16xf32>
    %70 = tpu.matmul %69, %67, %cst_87 {dimension_numbers = #tpu.dot_dimension_numbers<[1], [0], [0], [1], [0, 0, 1, 1], [], []>} : vector<16x16xf32>, vector<16x16xf32>, vector<16x16xf32> -> vector<16x16xf32>
    %71 = arith.addf %64, %70 : vector<16x16xf32>
    %c0_88 = arith.constant 0 : index
    %c2_89 = arith.constant 2 : index
    %c0_90 = arith.constant 0 : index
    %c0_91 = arith.constant 0 : index
    %72 = vector.load %arg4[%c0_88, %c2_89, %c0_90, %c0_91] : memref<1x3x16x16xf32, #tpu.memory_space<vmem>>, vector<1x1x16x16xf32>
    %73 = vector.shape_cast %72 : vector<1x1x16x16xf32> to vector<16x16xf32>
    %74 = vector.shape_cast %71 : vector<16x16xf32> to vector<1x1x16x16xf32>
    tpu.vector_store %arg4[%c0_88, %c2_89, %c0_90, %c0_91], %74 {strides = array<i32>} : memref<1x3x16x16xf32, #tpu.memory_space<vmem>>, vector<1x1x16x16xf32>,
    return
  }
  func.func @transform_0(%arg0: i32) -> (i32, i32, i32, i32) {
    %c0_i32 = arith.constant 0 : i32
    %c0_i32_0 = arith.constant 0 : i32
    %c0_i32_1 = arith.constant 0 : i32
    %c0_i32_2 = arith.constant 0 : i32
    return %arg0, %c0_i32, %c0_i32_0, %c0_i32_1 : i32, i32, i32, i32
  }
  func.func @transform_1(%arg0: i32) -> (i32, i32, i32) {
    %c0_i32 = arith.constant 0 : i32
    %c0_i32_0 = arith.constant 0 : i32
    %c0_i32_1 = arith.constant 0 : i32
    %c0_i32_2 = arith.constant 0 : i32
    return %c0_i32, %c0_i32_0, %c0_i32_1 : i32, i32, i32
  }
  func.func @transform_2(%arg0: i32) -> (i32, i32, i32) {
    %c0_i32 = arith.constant 0 : i32
    %c0_i32_0 = arith.constant 0 : i32
    %c0_i32_1 = arith.constant 0 : i32
    %c0_i32_2 = arith.constant 0 : i32
    return %c0_i32, %c0_i32_0, %c0_i32_1 : i32, i32, i32
  }
  func.func @transform_3(%arg0: i32) -> (i32, i32, i32, i32) {
    %c0_i32 = arith.constant 0 : i32
    %c0_i32_0 = arith.constant 0 : i32
    %c0_i32_1 = arith.constant 0 : i32
    %c0_i32_2 = arith.constant 0 : i32
    return %arg0, %c0_i32, %c0_i32_0, %c0_i32_1 : i32, i32, i32, i32
  }
}

</mosaic_0001>

<bundles_post_ra>
// kernel: tpu_custom_call.1
= control target key start
LH: loop header
LB: loop body
LE: loop exit
PB: predicated region body
PF: predicated region fallthrough
CT: control target
= control target key end

     0   :  { %8 = vsyncpa [#allocation3], 0  ;;  %s2705_s0 = inlined_call_operand.hbm [shape: f32[2,3,16,16], index: 0, kind: input, shape index: {}]   ;;  %s2706_s1 = inlined_call_operand.hbm [shape: f32[3,16,16], index: 1, kind: input, shape index: {}]   ;;  %s2707_s2 = inlined_call_operand.hbm [shape: f32[3,16,16], index: 2, kind: input, shape index: {}]   ;;  %s2708_s3 = inlined_call_operand.hbm [shape: f32[2,3,16,16], index: 3, kind: output, shape index: {}]  }
   0x1   :  { %10 = vsyncpa [#allocation3 + $0x1], 0 }
   0x2   :  { %11 = vsyncpa [#allocation6], 0 }
   0x3   :  { %12 = vsyncpa [#allocation4], 0 }
   0x4   :  { %14 = vsyncpa [#allocation4 + $0x1], 0  ;;  %s2408_s12 = smov 0   ;;  %s2410_s13 = smov 0  }
   0x5   :  { %s2412_s14 = smov 0   ;;  %s2414_s15 = smov 0  }
   0x6 LB: > { %s2429_s16 = sadd.s32 4294967295, %s2378_s15   ;;  %s1809_s17 = sadd.s32 4294967294, %s2378_s15   ;;  %s2378_s15 = sphi %s2414_s15, %s2728_s15   ;;  %s2374_s14 = sphi %s2412_s14, %s2727_s14   ;;  %s2370_s13 = sphi %s2410_s13, %s2726_s13   ;;  %s2366_s12 = sphi %s2408_s12, %s2725_s12  }
   0x7   : > { %p40_p0 = scmp.ne.s32.totalorder %s2370_s13, %s2366_s12  ;;  %p2709_p1 = scmp.eq.s32.totalorder %s2429_s16, 0 }
   0x8   : > { %p112_p3 = scmp.eq.s32.totalorder %s1809_s17, 1  ;;  %p1810_p5 = scmp.ge.s32.totalorder %s2378_s15, 1 }
   0x9   : > { %p2438_p4 = por %p2709_p1, %p40_p0  ;;  %p119_p7 = scmp.lt.s32.totalorder %s2378_s15, 3 }
   0xa   : > { %p2443_p6 = por %p112_p3, %p40_p0  ;;  %s2380_s21 = smov [#allocation5]  }
   0xb   : > { %s2712_s18 = scalar_select %p2438_p4, 1, 0 }
   0xc   : > { %s2713_s19 = scalar_select %p2443_p6, 1, 0 }
   0xd   : > { %p2448_p8 = pnand %p1810_p5, %p119_p7  ;;  %s131_s22 = sshll.u32 %s2380_s21, 4  ;;  %s2452_s22 = int_to_ptr.vmem [resolvable:$true] %s131_s22 }
   0xe   : > { %s2381_s24 = smov [#allocation7]   ;;  %s2222_s28 = scalar_lea.hbm %s2706_s1, 768 }
   0xf   : > { %p2163_p9 = pneg %p2448_p8  ;;  %s144_s25 = sshll.u32 %s2381_s24, 4  ;;  %s2463_s25 = int_to_ptr.vmem [resolvable:$true] %s144_s25 }
  0x10   : > { %p2223_p12 = scmp.ne.s32.totalorder %s2706_s1, %s2222_s28  ;;  %p2229_p5 = scmp.lt.u32.totalorder %s2222_s28, %s2706_s1 }
  0x11   : > { %p2459_p11 = pnand %p2163_p9, %p2709_p1 }
  0x13   : > { %p2224_p13 = pneg %p2459_p11 }
  0x15   : > { %p2225_p0 = pnand %p2224_p13, %p2223_p12 }
  0x17   : > { %p2226_p3 = pneg %p2225_p0 }
  0x19   : > { %p2231_p7 = pnand %p2229_p5, %p2226_p3 }
  0x1b   : > { %2234 = shalt.err (!%p2231_p7)
}
  0x1c   : > { %s2235_s6 = scalar_lea.vmem %s2452_s22, 768  ;;  %p2243_p2 = scmp.lt.s32.totalorder %s2452_s22, %s2452_s22 }
  0x1d   : > { %p2236_p9 = scmp.ne.s32.totalorder %s2452_s22, %s2235_s6  ;;  %p2244_p12 = scmp.lt.s32.totalorder %s2235_s6, %s2235_s6 }
  0x1f   : > { %p2238_p10 = pnand %p2236_p9, %p2224_p13  ;;  %p2245_p0 = por %p2244_p12, %p2243_p2 }
  0x21   : > { %p2239_p1 = pneg %p2238_p10 }
  0x23   : > { %p2246_p6 = pnand %p2245_p0, %p2239_p1 }
  0x25   : > { %2249 = shalt.err (!%p2246_p6)
}
  0x26   : > { %s2382_s7 = smov 128   ;;  %s2383_s8 = smov 8  }
  0x27   : > { %2166 = dma.hbm_to_vmem [thread:$0]  (!%p2459_p11), %s2706_s1, 768, %s2452_s22, [#allocation6], %s2382_s7, %s2382_s7, %s2383_s8  }
  0x28   : > { %s2250_s21 = scalar_lea.hbm %s2707_s2, 768 }
  0x29   : > { %p2251_p1 = scmp.ne.s32.totalorder %s2707_s2, %s2250_s21  ;;  %p2257_p10 = scmp.lt.u32.totalorder %s2250_s21, %s2707_s2 }
  0x2b   : > { %p2253_p2 = pnand %p2251_p1, %p2224_p13 }
  0x2d   : > { %p2254_p6 = pneg %p2253_p2 }
  0x2f   : > { %p2259_p3 = pnand %p2257_p10, %p2254_p6 }
  0x31   : > { %2262 = shalt.err (!%p2259_p3)
}
  0x32   : > { %s2263_s22 = scalar_lea.vmem %s2463_s25, 768  ;;  %p2271_p12 = scmp.lt.s32.totalorder %s2463_s25, %s2463_s25 }
  0x33   : > { %p2264_p5 = scmp.ne.s32.totalorder %s2463_s25, %s2263_s22  ;;  %p2272_p0 = scmp.lt.s32.totalorder %s2263_s22, %s2263_s22 }
  0x35   : > { %p2266_p7 = pnand %p2264_p5, %p2224_p13  ;;  %p2273_p1 = por %p2272_p0, %p2271_p12 }
  0x37   : > { %p2267_p9 = pneg %p2266_p7 }
  0x39   : > { %p2274_p2 = pnand %p2273_p1, %p2267_p9 }
  0x3b   : > { %2277 = shalt.err (!%p2274_p2)
}
  0x3c   : > { %2169 = dma.hbm_to_vmem [thread:$0]  (!%p2459_p11), %s2707_s2, 768, %s2463_s25, [#allocation6], %s2382_s7, %s2382_s7, %s2383_s8  }
  0x3d   : > { %s2524_s23 = sadd.s32 1, %s2378_s15   ;;  %s27_s4 = sadd.s32 1, %s2374_s14 }
  0x3e   : > { %s24_s5 = ssub.s32 %s2378_s15, %s2524_s23  ;;  %p34_p13 = scmp.ne.s32.totalorder %s2374_s14, %s2370_s13 }
  0x3f   : > { %p25_p6 = scmp.eq.s32.totalorder %s24_s5, 0  ;;  %p35_p10 = scmp.eq.s32.totalorder %s2378_s15, 0 }
  0x40   : > { %p2716_p3 = scmp.eq.s32.totalorder %s2429_s16, 1  ;;  %p2180_p7 = scmp.lt.s32.totalorder %s2378_s15, 2 }
  0x41   : > { %s2540_s9 = scalar_select %p25_p6, %s2374_s14, %s27_s4  }
  0x42   : > { %p2534_p5 = por %p2716_p3, %p34_p13  ;;  %p36_p9 = por %p35_p10, %p34_p13 }
  0x43   : > { %s158_s10 = sand.u32 1, %s2374_s14   ;;  %s2148_s25 = smul.u32 768, %s2378_s15 }
  0x44   : > { %s2717_s6 = scalar_select %p2534_p5, 1, 0 }
  0x45   : > { %s2147_s11 = smul.u32 48, %s158_s10  ;;  %p2544_p11 = pnand %p2180_p7, %p36_p9 }
  0x46   : > { %s2551_s26 = scalar_lea.hbm %s2705_s0, %s2148_s25  ;;  %s2555_s22 = scalar_lea.sflag [#allocation3], %s158_s10 }
  0x47   : > { %s162_s27 = scalar_lea.vmem [#allocation2], %s2147_s11  ;;  %s2278_s29 = scalar_lea.hbm %s2551_s26, 768 }
  0x48   : > { %s169_s28 = sshll.u32 %s162_s27, 4  ;;  %p2279_p12 = scmp.ne.s32.totalorder %s2551_s26, %s2278_s29  ;;  %s2553_s28 = int_to_ptr.vmem [resolvable:$true] %s169_s28 }
  0x49   : > { %p2280_p0 = pneg %p2544_p11  ;;  %s2283_s5 = scalar_lea.hbm %s2705_s0, 1536 }
  0x4a   : > { %p2284_p13 = scmp.lt.u32.totalorder %s2551_s26, %s2705_s0  ;;  %p2285_p6 = scmp.lt.u32.totalorder %s2283_s5, %s2278_s29 }
  0x4b   : > { %p2281_p1 = pnand %p2280_p0, %p2279_p12  ;;  %p2287_p3 = scmp.lt.u32.totalorder %s2278_s29, %s2551_s26 }
  0x4c   : > { %p2286_p10 = por %p2285_p6, %p2284_p13 }
  0x4d   : > { %p2282_p2 = pneg %p2281_p1 }
  0x4e   : > { %p2288_p7 = por %p2287_p3, %p2286_p10 }
  0x50   : > { %p2289_p9 = pnand %p2288_p7, %p2282_p2 }
  0x52   : > { %2292 = shalt.err (!%p2289_p9)
}
  0x53   : > { %s2293_s10 = scalar_lea.vmem %s2553_s28, 768  ;;  %s2384_s11 = smov [#allocation2]  }
  0x54   : > { %p2294_p12 = scmp.ne.s32.totalorder %s2553_s28, %s2293_s10  ;;  %s2298_s24 = sshll.u32 %s2384_s11, 4  ;;  %s2299_s24 = int_to_ptr.vmem [resolvable:$false] %s2298_s24 }
  0x55   : > { %s2300_s27 = scalar_lea.vmem %s2299_s24, 1536  ;;  %p2301_p4 = scmp.lt.s32.totalorder %s2553_s28, %s2299_s24 }
  0x56   : > { %p2296_p1 = pnand %p2294_p12, %p2280_p0  ;;  %p2302_p13 = scmp.lt.s32.totalorder %s2300_s27, %s2293_s10 }
  0x58   : > { %p2297_p5 = pneg %p2296_p1  ;;  %p2303_p6 = por %p2302_p13, %p2301_p4 }
  0x5a   : > { %p2304_p10 = pnand %p2303_p6, %p2297_p5 }
  0x5c   : > { %2307 = shalt.err (!%p2304_p10)
}
  0x5d   : > { %2173 = dma.hbm_to_vmem [thread:$0]  (!%p2544_p11), %s2551_s26, 768, %s2553_s28, %s2555_s22, %s2382_s7, %s2382_s7, %s2383_s8  }
  0x5e   : > { %181 = sbr.rel (%p2448_p8) target bundleno = 619 (0x26b), region = 32  ;;  %s2589_s29 = sand.u32 (!%p2448_p8), 1, %s2370_s13  }
  0x5f   : > { %s2149_s30 = smul.u32 (!%p2448_p8), 48, %s2589_s29  ;;  %s184_s4 = scalar_lea.sflag (!%p2448_p8), [#allocation3], %s2589_s29 }
  0x60   : > { %p2719_p4 = scmp.ne.s32.totalorder (!%p2448_p8), %s2712_s18, 0 }
  0x61   : > { %s2595_s17 = scalar_lea.vmem (!%p2448_p8), [#allocation2], %s2149_s30 }
  0x65   : > { %2353 = dma.done.wait (%p2719_p4), %s184_s4, 768  }
  0x66   : > { %2355 = vsyncadd (%p2719_p4), %s184_s4, 4294966528  ;;  %p2720_p5 = scmp.eq.s32.totalorder %s2429_s16, 0 }
  0x68   : > { %2357 = dma.done.wait (%p2720_p5), [#allocation6], 1536   ;;  %p2721_p8 = pmov %p2720_p5 }
  0x69   : > { %vm222_vm0 = vcmask 130048   ;;  %v220_v0 = vld [vmem:[#allocation7] sm:$0xff]  ;;  %v221_v1 = vld [vmem:[#allocation7 + $0x8] sm:$0xff]  ;;  %v307_v4 = vld [vmem:[#allocation7 + $0x10] sm:$0xff]  ;;  %s217_s18 = scalar_lea.vmem [#allocation8], %s2149_s30  ;;  %s2150_s7 = smul.u32 768, %s2429_s16 }
  0x6a   : > { %2359 = vsyncadd (%p2721_p8), [#allocation6], 4294965760  ;;  %v218_v2 = vld [vmem:[%s2595_s17] sm:$0xff]  ;;  %v2063_v3 = vpack.c.bf16 %v221_v1, %v220_v0  ;;  %v308_v5 = vld [vmem:[#allocation7 + $0x18] sm:$0xff]  ;;  %s1717_s20 = sshll.u32 %s217_s18, 4  ;;  %s1704_s22 = scalar_lea.sflag [#allocation4], %s2589_s29  ;;  %s2654_s20 = int_to_ptr.vmem [resolvable:$true] %s1717_s20 }
  0x6b   : > { %1941 = vmatprep.mubr.msk.f32.mxu1 %vm222_vm0, %v218_v2  ;;  %v2067_v6 = vpack.c.bf16 %v308_v5, %v307_v4  ;;  %v550_v7 = vld [vmem:[#allocation7 + $0x20] sm:$0xff]  ;;  %v551_v8 = vld [vmem:[#allocation7 + $0x28] sm:$0xff]  ;;  %v304_v26 = vld [vmem:[#allocation5] sm:$0xff]  ;;  %s2659_s28 = scalar_lea.hbm %s2708_s3, %s2150_s7  ;;  %s2308_s5 = scalar_lea.vmem %s2654_s20, 768 }
  0x6c   : > { %2064 = vmatprep.subr.bf16.mxu1 %v2063_v3  ;;  %v219_v9 = vld [vmem:[%s2595_s17 + $0x8] sm:$0xff]  ;;  %v2079_v10 = vpack.c.bf16 %v551_v8, %v550_v7  ;;  %v1830_v11 = vld [vmem:[%s2595_s17 + $0x10] sm:$0xff]  ;;  %v1831_v12 = vld [vmem:[%s2595_s17 + $0x18] sm:$0xff]  ;;  %p2309_p11 = scmp.ne.s32.totalorder %s2654_s20, %s2308_s5  ;;  %p2722_p0 = scmp.ne.s32.totalorder %s2717_s6, 0 }
  0x6d   : > { %2066 = vmatpush3.bf16.msra.mxu1 %v2063_v3  ;;  %v1846_v13 = vld [vmem:[%s2595_s17 + $0x20] sm:$0xff]  ;;  %v1847_v14 = vld [vmem:[%s2595_s17 + $0x28] sm:$0xff]  ;;  %s2385_s16 = smov [#allocation8]  }
  0x6e   : > { %2068 = vmatprep.subr.bf16.mxu1 %v2067_v6  ;;  %v385_v15 = vld [vmem:[#allocation5 + $0x10] sm:$0xff]  ;;  %v386_v23 = vld [vmem:[#allocation5 + $0x18] sm:$0xff]  ;;  %v305_v31 = vld [vmem:[#allocation5 + $0x8] sm:$0xff]  ;;  %p2310_p2 = pnand %p2309_p11, %p2722_p0  ;;  %s2312_s25 = sshll.u32 %s2385_s16, 4  ;;  %s2313_s25 = int_to_ptr.vmem [resolvable:$false] %s2312_s25 }
  0x6f   : > { %1955 = vmatprep.mubr.msk.f32.mxu0 %vm222_vm0, %v385_v15  ;;  %v628_v34 = vld [vmem:[#allocation5 + $0x20] sm:$0xff]  ;;  %v629_v39 = vld [vmem:[#allocation5 + $0x28] sm:$0xff]  ;;  %s2314_s21 = scalar_lea.vmem %s2313_s25, 1536  ;;  %p2315_p7 = scmp.lt.s32.totalorder %s2654_s20, %s2313_s25 }
  0x70   : > { %1942 = vmatmul.mubr.msk.f32.vlgmr.msra.gmra.mrb[0].mxu1 %vm222_vm0, %v219_v9  ;;  %p2311_p3 = pneg %p2310_p2  ;;  %p2316_p9 = scmp.lt.s32.totalorder %s2314_s21, %s2308_s5 }
  0x71   : > { %2070 = vmatpush3.bf16.msra.mxu1 %v2067_v6  ;;  %1948 = vmatprep.mubr.msk.f32.mxu1 %vm222_vm0, %v218_v2 }
  0x72   : > { %2080 = vmatprep.subr.bf16.mxu1 %v2079_v10  ;;  %p2317_p12 = por %p2316_p9, %p2315_p7 }
  0x74   : > { %1949 = vmatmul.mubr.msk.f32.vlgmr.msra.gmra.mrb[2].mxu1 %vm222_vm0, %v219_v9  ;;  %p2318_p1 = pnand %p2317_p12, %p2311_p3 }
  0x75   : > { %2082 = vmatpush3.bf16.msra.mxu1 %v2079_v10  ;;  %1969 = vmatprep.mubr.msk.f32.mxu1 %vm222_vm0, %v218_v2 }
  0x76   : > { %2088 = vmatprep.subr.bf16.mxu1 %v2063_v3 }
  0x78   : > { %1970 = vmatmul.mubr.msk.f32.vlgmr.msra.gmra.mrb[4].mxu1 %vm222_vm0, %v219_v9 }
  0x79   : > { %2090 = vmatpush3.bf16.msra.mxu1 %v2063_v3  ;;  %1983 = vmatprep.mubr.msk.f32.mxu1 %vm222_vm0, %v1830_v11 }
  0x7a   : > { %2092 = vmatprep.subr.bf16.mxu1 %v2067_v6 }
  0x7c   : > { %1984 = vmatmul.mubr.msk.f32.vlgmr.msra.gmra.mrb[6].mxu1 %vm222_vm0, %v1831_v12 }
  0x7d   : > { %2094 = vmatpush3.bf16.msra.mxu1 %v2067_v6  ;;  %1990 = vmatprep.mubr.msk.f32.mxu1 %vm222_vm0, %v1830_v11 }
  0x7e   : > { %2104 = vmatprep.subr.bf16.mxu1 %v2079_v10 }
  0x80   : > { %1991 = vmatmul.mubr.msk.f32.vlgmr.msra.gmra.mrb[8].mxu1 %vm222_vm0, %v1831_v12 }
  0x81   : > { %2106 = vmatpush3.bf16.msra.mxu1 %v2079_v10  ;;  %2011 = vmatprep.mubr.msk.f32.mxu1 %vm222_vm0, %v1830_v11 }
  0x82   : > { %2112 = vmatprep.subr.bf16.mxu1 %v2063_v3 }
  0x84   : > { %2012 = vmatmul.mubr.msk.f32.vlgmr.msra.gmra.mrb[10].mxu1 %vm222_vm0, %v1831_v12 }
  0x85   : > { %2114 = vmatpush3.bf16.msra.mxu1 %v2063_v3  ;;  %2025 = vmatprep.mubr.msk.f32.mxu1 %vm222_vm0, %v1846_v13 }
  0x86   : > { %2116 = vmatprep.subr.bf16.mxu1 %v2067_v6 }
  0x88   : > { %2026 = vmatmul.mubr.msk.f32.vlgmr.msra.gmra.mrb[12].mxu1 %vm222_vm0, %v1847_v14 }
  0x89   : > { %2118 = vmatpush3.bf16.msra.mxu1 %v2067_v6  ;;  %2032 = vmatprep.mubr.msk.f32.mxu1 %vm222_vm0, %v1846_v13 }
  0x8a   : > { %2128 = vmatprep.subr.bf16.mxu1 %v2079_v10 }
  0x8c   : > { %2033 = vmatmul.mubr.msk.f32.vlgmr.msra.gmra.mrb[14].mxu1 %vm222_vm0, %v1847_v14 }
  0x8d   : > { %2130 = vmatpush3.bf16.msra.mxu1 %v2079_v10  ;;  %2053 = vmatprep.mubr.msk.f32.mxu1 %vm222_vm0, %v1846_v13 }
  0x90   : > { %2054 = vmatmul.mubr.msk.f32.vlgmr.msra.gmra.mrb[16].mxu1 %vm222_vm0, %v1847_v14 }
 0x143   : > { %v1943_v16 = vpop.f32.mrb[0].mxu1 }
 0x144   : > { %v295_v17 = vpop.f32.mrb[1].mxu1 }
 0x145   : > { %v2075_v18 = vpack.c.bf16 %v1943_v16, %v295_v17 }
 0x147   : > { %v1950_v19 = vpop.f32.mrb[2].mxu1 }
 0x148   : > { %v375_v20 = vpop.f32.mrb[3].mxu1 }
 0x149   : > { %v2071_v21 = vpack.c.bf16 %v1950_v19, %v375_v20 }
 0x14b   : > { %2072 = vmatprep.subr.bf16.mxu0 %v2071_v21  ;;  %v1971_v22 = vpop.f32.mrb[4].mxu1 }
 0x14c   : > { %2074 = vmatpush3.bf16.msra.mxu0 %v2071_v21  ;;  %v618_v24 = vpop.f32.mrb[5].mxu1 }
 0x14d   : > { %2076 = vmatprep.subr.bf16.mxu0 %v2075_v18  ;;  %v2083_v25 = vpack.c.bf16 %v1971_v22, %v618_v24 }
 0x14f   : > { %1956 = vmatmul.mubr.msk.f32.vlgmr.msra.gmra.mrb[0].mxu0 %vm222_vm0, %v386_v23  ;;  %v1985_v27 = vpop.f32.mrb[6].mxu1 }
 0x150   : > { %2078 = vmatpush3.bf16.msra.mxu0 %v2075_v18  ;;  %1962 = vmatprep.mubr.msk.f32.mxu0 %vm222_vm0, %v304_v26  ;;  %v792_v28 = vpop.f32.mrb[7].mxu1 }
 0x151   : > { %2084 = vmatprep.subr.bf16.mxu0 %v2083_v25  ;;  %v2099_v29 = vpack.c.bf16 %v1985_v27, %v792_v28 }
 0x153   : > { %v1992_v30 = vpop.f32.mrb[8].mxu1 }
 0x154   : > { %v871_v32 = vpop.f32.mrb[9].mxu1 }
 0x155   : > { %v2095_v33 = vpack.c.bf16 %v1992_v30, %v871_v32 }
 0x157   : > { %1963 = vmatmul.mubr.msk.f32.vlgmr.msra.gmra.mrb[0].mxu0 %vm222_vm0, %v305_v31  ;;  %v2013_v35 = vpop.f32.mrb[10].mxu1 }
 0x158   : > { %2086 = vmatpush3.bf16.msra.mxu0 %v2083_v25  ;;  %1976 = vmatprep.mubr.msk.f32.mxu0 %vm222_vm0, %v628_v34  ;;  %v1112_v36 = vpop.f32.mrb[11].mxu1 }
 0x159   : > { %2096 = vmatprep.subr.bf16.mxu0 %v2095_v33  ;;  %v2107_v37 = vpack.c.bf16 %v2013_v35, %v1112_v36 }
 0x15b   : > { %v2027_v38 = vpop.f32.mrb[12].mxu1 }
 0x15c   : > { %v1286_v40 = vpop.f32.mrb[13].mxu1 }
 0x15d   : > { %v2123_v41 = vpack.c.bf16 %v2027_v38, %v1286_v40 }
 0x15f   : > { %1977 = vmatmul.mubr.msk.f32.vlgmr.msra.gmra.mrb[0].mxu0 %vm222_vm0, %v629_v39  ;;  %v2034_v42 = vpop.f32.mrb[14].mxu1 }
 0x160   : > { %2098 = vmatpush3.bf16.msra.mxu0 %v2095_v33  ;;  %1997 = vmatprep.mubr.msk.f32.mxu0 %vm222_vm0, %v385_v15  ;;  %v1365_v43 = vpop.f32.mrb[15].mxu1 }
 0x161   : > { %2100 = vmatprep.subr.bf16.mxu0 %v2099_v29  ;;  %v2119_v44 = vpack.c.bf16 %v2034_v42, %v1365_v43 }
 0x163   : > { %1998 = vmatmul.mubr.msk.f32.vlgmr.msra.gmra.mrb[2].mxu0 %vm222_vm0, %v386_v23  ;;  %v2055_v45 = vpop.f32.mrb[16].mxu1 }
 0x164   : > { %2102 = vmatpush3.bf16.msra.mxu0 %v2099_v29  ;;  %2004 = vmatprep.mubr.msk.f32.mxu0 %vm222_vm0, %v304_v26  ;;  %v1606_v46 = vpop.f32.mrb[17].mxu1 }
 0x165   : > { %2108 = vmatprep.subr.bf16.mxu0 %v2107_v37  ;;  %v2131_v47 = vpack.c.bf16 %v2055_v45, %v1606_v46 }
 0x16b   : > { %2005 = vmatmul.mubr.msk.f32.vlgmr.msra.gmra.mrb[2].mxu0 %vm222_vm0, %v305_v31 }
 0x16c   : > { %2110 = vmatpush3.bf16.msra.mxu0 %v2107_v37  ;;  %2018 = vmatprep.mubr.msk.f32.mxu0 %vm222_vm0, %v628_v34 }
 0x16d   : > { %2120 = vmatprep.subr.bf16.mxu0 %v2119_v44 }
 0x173   : > { %2019 = vmatmul.mubr.msk.f32.vlgmr.msra.gmra.mrb[2].mxu0 %vm222_vm0, %v629_v39 }
 0x174   : > { %2122 = vmatpush3.bf16.msra.mxu0 %v2119_v44  ;;  %2039 = vmatprep.mubr.msk.f32.mxu0 %vm222_vm0, %v385_v15 }
 0x175   : > { %2124 = vmatprep.subr.bf16.mxu0 %v2123_v41 }
 0x177   : > { %2040 = vmatmul.mubr.msk.f32.vlgmr.msra.gmra.mrb[4].mxu0 %vm222_vm0, %v386_v23 }
 0x178   : > { %2126 = vmatpush3.bf16.msra.mxu0 %v2123_v41  ;;  %2046 = vmatprep.mubr.msk.f32.mxu0 %vm222_vm0, %v304_v26 }
 0x179   : > { %2132 = vmatprep.subr.bf16.mxu0 %v2131_v47 }
 0x17f   : > { %2047 = vmatmul.mubr.msk.f32.vlgmr.msra.gmra.mrb[4].mxu0 %vm222_vm0, %v305_v31 }
 0x180   : > { %2134 = vmatpush3.bf16.msra.mxu0 %v2131_v47  ;;  %2060 = vmatprep.mubr.msk.f32.mxu0 %vm222_vm0, %v628_v34 }
 0x187   : > { %2061 = vmatmul.mubr.msk.f32.vlgmr.msra.gmra.mrb[4].mxu0 %vm222_vm0, %v629_v39 }
 0x232   : > { %v1978_v48 = vpop.f32.mrb[0].mxu0 }
 0x233   : > { %714 = vst.msk [vmem:[%s217_s18 + $0x8] sm:$0xff] %vm222_vm0, %v1978_v48  ;;  %v702_v49 = vpop.f32.mrb[1].mxu0 }
 0x234   : > { %713 = vst.msk [vmem:[%s217_s18] sm:$0xff] %vm222_vm0, %v702_v49 }
 0x246   : > { %v2020_v50 = vpop.f32.mrb[2].mxu0 }
 0x247   : > { %1845 = vst.msk [vmem:[%s217_s18 + $0x18] sm:$0xff] %vm222_vm0, %v2020_v50  ;;  %v1195_v51 = vpop.f32.mrb[3].mxu0 }
 0x248   : > { %1844 = vst.msk [vmem:[%s217_s18 + $0x10] sm:$0xff] %vm222_vm0, %v1195_v51 }
 0x25a   : > { %v2062_v52 = vpop.f32.mrb[4].mxu0 }
 0x25b   : > { %1861 = vst.msk [vmem:[%s217_s18 + $0x28] sm:$0xff] %vm222_vm0, %v2062_v52  ;;  %v1689_v53 = vpop.f32.mrb[5].mxu0 }
 0x25c   : > { %1860 = vst.msk [vmem:[%s217_s18 + $0x20] sm:$0xff] %vm222_vm0, %v1689_v53 }
 0x25d   : > { %2321 = shalt.err (!%p2318_p1)
}
 0x25e   : > { %s2322_s10 = scalar_lea.hbm %s2659_s28, 768  ;;  %s2326_s27 = scalar_lea.hbm %s2708_s3, 1536 }
 0x25f   : > { %p2323_p13 = scmp.ne.s32.totalorder %s2659_s28, %s2322_s10  ;;  %p2327_p4 = scmp.lt.u32.totalorder %s2659_s28, %s2708_s3 }
 0x260   : > { %p2328_p5 = scmp.lt.u32.totalorder %s2326_s27, %s2322_s10  ;;  %p2330_p11 = scmp.lt.u32.totalorder %s2322_s10, %s2659_s28 }
 0x261   : > { %p2324_p6 = pnand %p2323_p13, %p2722_p0 }
 0x262   : > { %p2329_p8 = por %p2328_p5, %p2327_p4 }
 0x263   : > { %p2325_p10 = pneg %p2324_p6 }
 0x264   : > { %p2331_p2 = por %p2330_p11, %p2329_p8 }
 0x266   : > { %p2332_p3 = pnand %p2331_p2, %p2325_p10 }
 0x268   : > { %2335 = shalt.err (!%p2332_p3)
}
 0x269   : > { %s2386_s17 = smov 128   ;;  %s2387_s18 = smov 8  }
 0x26a   : > { %2161 = dma.vmem_to_hbm [thread:$0]  (%p2722_p0), %s2654_s20, 768, %s2659_s28, %s1704_s22, %s2386_s17, %s2386_s17, %s2387_s18  }
 0x26b PF: > { %s1732_s7 = sand.u32 1, %s2366_s12   ;;  %p2723_p7 = scmp.ne.s32.totalorder %s2713_s19, 0 }
 0x26c   : > { %p2724_p9 = scmp.ge.s32.totalorder %s2378_s15, 2  ;;  %s1733_s8 = scalar_lea.sflag [#allocation4], %s1732_s7 }
 0x26e   : > { %p2175_p12 = pnand %p2724_p9, %p2723_p7 }
 0x270   : > { %2361 = dma.done.wait (!%p2175_p12), %s1733_s8, 768  }
 0x271   : > { %2363 = vsyncadd (!%p2175_p12), %s1733_s8, 4294966528  ;;  %p17_p1 = scmp.ge.s32.totalorder %s2524_s23, 4   ;;  %s2725_s12 = smov %s2370_s13 }
 0x272   : > { %s2726_s13 = smov %s2374_s14  ;;  %s2727_s14 = smov %s2540_s9 }
 0x273   : > { %s2728_s15 = smov %s2524_s23  ;;  %19 = sbr.rel (!%p17_p1) target bundleno = 6 (0x6), region = 93 }
 0x27a   :  { %1738 = vsyncpa [#allocation3], 1 }
 0x27b   :  { %1740 = vsyncpa [#allocation3 + $0x1], 1 }
 0x27c   :  { %1741 = vsyncpa [#allocation6], 1 }
 0x27d   :  { %1742 = vsyncpa [#allocation4], 1 }
 0x27e   :  { %1744 = vsyncpa [#allocation4 + $0x1], 1 }

</bundles_post_ra>
